<compile_context>
chip_gen: v5e
topology: v5e:2x2
jax: 0.10.0
libtpu: 0.0.40
codegen_flags: <defaults>
</compile_context>

<pallas_src>
import jax
import jax.numpy as jnp
from jax.experimental import pallas as pl
from jax.experimental.pallas import tpu as pltpu

LANES = 128      # TPU lane width; hidden activations are padded to this.
OUT_LANES = 8    # lanes actually written to HBM (5 real classes + 3 zero pad)
NEG_BIG = -1e30  # finite "minus infinity" for softmax lane masking


def _round_up(n, m):
    return ((n + m - 1) // m) * m


def _cdiv(a, b):
    return (a + b - 1) // b


class MLPLayout:
    """Static row offsets of each parameter inside the packed (ROWS, 128) slab."""

    def __init__(self, input_dim):
        self.D, self.H1, self.H2, self.H3, self.OUT = input_dim, 50, 50, 20, 5
        self.D_PAD = _round_up(self.D, 8)

        off = 0
        self.W1_R = off; off += self.D_PAD   # w1: (D_PAD, 128), real (D, 50)
        self.B1_R = off; off += 8            # b1 in one row, cols [0, 50)
        self.W2_R = off; off += LANES        # w2: (128, 128), real (50, 50)
        self.B2_R = off; off += 8
        self.W3_R = off; off += LANES        # w3: (128, 128), real (50, 20)
        self.B3_R = off; off += 8
        self.W4_R = off; off += LANES        # w4: (128, 128), real (20, 5)
        self.B4_R = off; off += 8
        self.ROWS = _round_up(off, 8)


def pack_params(params, L):
    """Concatenate all weights/biases into one zero-padded (ROWS, 128) f32 slab."""
    slab = jnp.zeros((L.ROWS, LANES), jnp.float32)
    slab = slab.at[L.W1_R:L.W1_R + L.D,  :L.H1].set(params["w1"])
    slab = slab.at[L.B1_R,               :L.H1].set(params["b1"].reshape(-1))
    slab = slab.at[L.W2_R:L.W2_R + L.H1, :L.H2].set(params["w2"])
    slab = slab.at[L.B2_R,               :L.H2].set(params["b2"].reshape(-1))
    slab = slab.at[L.W3_R:L.W3_R + L.H2, :L.H3].set(params["w3"])
    slab = slab.at[L.B3_R,               :L.H3].set(params["b3"].reshape(-1))
    slab = slab.at[L.W4_R:L.W4_R + L.H3, :L.OUT].set(params["w4"])
    slab = slab.at[L.B4_R,               :L.OUT].set(params["b4"].reshape(-1))
    return slab


def make_mlp_kernel(L):
    """Kernel factory; L's offsets are static Python ints, so all slab slices
    below are zero-cost static views."""

    def kernel(x_ref, p_ref, o_ref):
        x = x_ref[...]                                   # (TB, D_PAD) f32

        w1 = p_ref[L.W1_R:L.W1_R + L.D_PAD, :]           # (D_PAD, 128)
        b1 = p_ref[L.B1_R:L.B1_R + 1, :]                 # (1, 128)
        h = jnp.maximum(
            jnp.dot(x, w1, preferred_element_type=jnp.float32) + b1, 0.0)

        w2 = p_ref[L.W2_R:L.W2_R + LANES, :]
        b2 = p_ref[L.B2_R:L.B2_R + 1, :]
        h = jnp.maximum(
            jnp.dot(h, w2, preferred_element_type=jnp.float32) + b2, 0.0)

        w3 = p_ref[L.W3_R:L.W3_R + LANES, :]
        b3 = p_ref[L.B3_R:L.B3_R + 1, :]
        h = jnp.maximum(
            jnp.dot(h, w3, preferred_element_type=jnp.float32) + b3, 0.0)

        w4 = p_ref[L.W4_R:L.W4_R + LANES, :]
        b4 = p_ref[L.B4_R:L.B4_R + 1, :]
        logits = jnp.dot(h, w4, preferred_element_type=jnp.float32) + b4  # (TB, 128)

        # Narrow softmax: only the first OUT_LANES lanes matter (5 real classes).
        # Mask padding lanes with a large finite negative (not -inf) so the
        # exp/sum over 8 lanes is exactly softmax over the 5 real classes.
        logits8 = logits[:, :OUT_LANES]                  # (TB, 8)
        lane = jax.lax.broadcasted_iota(jnp.int32, logits8.shape, 1)
        logits8 = jnp.where(lane < L.OUT, logits8, NEG_BIG)

        m = jnp.max(logits8, axis=1, keepdims=True)
        e = jnp.exp(logits8 - m)                         # padded lanes -> 0
        denom = jnp.sum(e, axis=1, keepdims=True)
        # Exact reciprocal: denom is only (TB, 1), so this is negligible work,
        # and it preserves the 1e-5 agreement with the f32 reference.
        o_ref[...] = (e * pl.reciprocal(denom, approx=False)).astype(o_ref.dtype)

    return kernel


def _pick_batch_tile(B):
    """Adaptive batch tile:
       - small batches: one tile of exactly round_up(B, 8) rows (no padded-row waste)
       - larger batches: >= 2 tiles (v7x dual TensorCore), <= 1024 rows per tile."""
    B8 = _round_up(max(B, 1), 8)
    if B8 <= 256:
        return B8
    n_tiles = max(2, _cdiv(B8, 1024))
    return _round_up(_cdiv(B8, n_tiles), 8)


def mlp_forward(x, slab, L, *, tb=None):
    """x: [batch, input_dim] f32. slab: packed params. Returns [batch, 5] probs."""
    B = x.shape[0]
    if tb is None:
        tb = _pick_batch_tile(B)
    num_tiles = max(1, _cdiv(B, tb))
    B_pad = num_tiles * tb

    # Pad batch rows (multiple of tb) and feature lanes (D_PAD). Zeros are
    # harmless: padded weight rows are zero and padded output rows are sliced.
    x_p = jnp.zeros((B_pad, L.D_PAD), jnp.float32).at[:B, :L.D].set(x)

    # Advisory cost hint so XLA schedules this tiny custom call sensibly.
    cost = pl.CostEstimate(
        flops=2 * B_pad * LANES * (L.D_PAD + 3 * LANES),
        transcendentals=B_pad * OUT_LANES,
        bytes_accessed=4 * (L.ROWS * LANES + B_pad * L.D_PAD + B_pad * OUT_LANES),
    )

    out = pl.pallas_call(
        make_mlp_kernel(L),
        out_shape=jax.ShapeDtypeStruct((B_pad, OUT_LANES), jnp.float32),
        grid=(num_tiles,),
        in_specs=[
            # batch tile of the input
            pl.BlockSpec((tb, L.D_PAD), lambda i: (i, 0)),
            # single packed parameter slab; constant index_map -> DMA'd once
            # and kept resident in VMEM across all batch tiles.
            pl.BlockSpec((L.ROWS, LANES), lambda i: (0, 0)),
        ],
        # Narrow (tb, 8) output block: last dim equals the full array dim, so it
        # is legal, and HBM writeback drops ~16x vs. a 128-lane output.
        out_specs=pl.BlockSpec((tb, OUT_LANES), lambda i: (i, 0)),
        compiler_params=pltpu.CompilerParams(
            dimension_semantics=("parallel",)),   # v7x: 2 TCs split batch tiles
        cost_estimate=cost,
    )(x_p, slab)

    return out[:B, :L.OUT]


def init_params(key, input_dim):
    dims = [(input_dim, 50), (50, 50), (50, 20), (20, 5)]
    params = {}
    for i, (din, dout) in enumerate(dims, start=1):
        key, kw, kb = jax.random.split(key, 3)
        bound = 1.0 / jnp.sqrt(jnp.float32(din))  # PyTorch Linear default init range
        params[f"w{i}"] = jax.random.uniform(
            kw, (din, dout), jnp.float32, minval=-bound, maxval=bound)
        params[f"b{i}"] = jax.random.uniform(
            kb, (1, dout), jnp.float32, minval=-bound, maxval=bound)
    return params


def reference_forward(x, p):
    h = jnp.maximum(x @ p["w1"] + p["b1"], 0.0)
    h = jnp.maximum(h @ p["w2"] + p["b2"], 0.0)
    h = jnp.maximum(h @ p["w3"] + p["b3"], 0.0)
    return jax.nn.softmax(h @ p["w4"] + p["b4"], axis=1)


if __name__ == "__main__":
    key = jax.random.PRNGKey(0)
    k_x, k_x2, k_p = jax.random.split(key, 3)

    input_dim = 13  # heart dataset: 13 features
    params = init_params(k_p, input_dim)
    layout = MLPLayout(input_dim)
    slab = pack_params(params, layout)

    # Small batch (single adaptive 8-row tile).
    batch = 8
    x = jax.random.normal(k_x, (batch, input_dim), jnp.float32)
    out = jax.block_until_ready(mlp_forward(x, slab, layout))
    ref = reference_forward(x, params)
    assert out.shape == (batch, 5)
    assert jnp.allclose(out, ref, atol=1e-5, rtol=1e-5)
    assert jnp.allclose(jnp.sum(out, axis=1), 1.0, atol=1e-5)

    # Larger batch (exercises the >=2-tile path + padded batch rows).
    batch2 = 300
    x2 = jax.random.normal(k_x2, (batch2, input_dim), jnp.float32)
    out2 = jax.block_until_ready(mlp_forward(x2, slab, layout))
    ref2 = reference_forward(x2, params)
    assert out2.shape == (batch2, 5)
    assert jnp.allclose(out2, ref2, atol=1e-5, rtol=1e-5)
    assert jnp.allclose(jnp.sum(out2, axis=1), 1.0, atol=1e-5)

    print("KERNEL_OK")
</pallas_src>

<mosaic_0001>
module attributes {stable_mosaic.version = 11 : i64} {
  func.func @kernel(%arg0: i32, %arg1: memref<8x16xf32, #tpu.memory_space<vmem>>, %arg2: memref<432x128xf32, #tpu.memory_space<vmem>>, %arg3: memref<8x8xf32, #tpu.memory_space<vmem>>) attributes {dimension_semantics = [#tpu.dimension_semantics<parallel>], iteration_bounds = array<i64: 1>, scalar_prefetch = 0 : i64, scratch_operands = 0 : i64, tpu.core_type = #tpu.core_type<tc>, window_params = [{transform_indices = @transform_0, window_bounds = array<i64: 8, 16>}, {pipeline_mode = #tpu.pipeline_mode<synchronous>, transform_indices = @transform_1, window_bounds = array<i64: 432, 128>}, {transform_indices = @transform_2, window_bounds = array<i64: 8, 8>}]} {
    %c0 = arith.constant 0 : index
    %c0_0 = arith.constant 0 : index
    %0 = vector.load %arg1[%c0, %c0_0] : memref<8x16xf32, #tpu.memory_space<vmem>>, vector<8x16xf32>
    %c0_1 = arith.constant 0 : index
    %c0_2 = arith.constant 0 : index
    %1 = vector.load %arg2[%c0_1, %c0_2] : memref<432x128xf32, #tpu.memory_space<vmem>>, vector<16x128xf32>
    %c16 = arith.constant 16 : index
    %c0_3 = arith.constant 0 : index
    %2 = vector.load %arg2[%c16, %c0_3] : memref<432x128xf32, #tpu.memory_space<vmem>>, vector<1x128xf32>
    %cst = arith.constant dense<0.000000e+00> : vector<8x128xf32>
    %3 = tpu.matmul %0, %1, %cst {dimension_numbers = #tpu.dot_dimension_numbers<[1], [0], [0], [1], [0, 0, 1, 1], [], []>} : vector<8x16xf32>, vector<16x128xf32>, vector<8x128xf32> -> vector<8x128xf32>
    %4 = vector.broadcast %2 : vector<1x128xf32> to vector<8x128xf32>
    %5 = arith.addf %3, %4 : vector<8x128xf32>
    %cst_4 = arith.constant 0.000000e+00 : f32
    %6 = vector.broadcast %cst_4 : f32 to vector<8x128xf32>
    %7 = arith.maximumf %5, %6 : vector<8x128xf32>
    %c24 = arith.constant 24 : index
    %c0_5 = arith.constant 0 : index
    %8 = vector.load %arg2[%c24, %c0_5] : memref<432x128xf32, #tpu.memory_space<vmem>>, vector<128x128xf32>
    %c152 = arith.constant 152 : index
    %c0_6 = arith.constant 0 : index
    %9 = vector.load %arg2[%c152, %c0_6] : memref<432x128xf32, #tpu.memory_space<vmem>>, vector<1x128xf32>
    %cst_7 = arith.constant dense<0.000000e+00> : vector<8x128xf32>
    %10 = tpu.matmul %7, %8, %cst_7 {dimension_numbers = #tpu.dot_dimension_numbers<[1], [0], [0], [1], [0, 0, 1, 1], [], []>} : vector<8x128xf32>, vector<128x128xf32>, vector<8x128xf32> -> vector<8x128xf32>
    %11 = vector.broadcast %9 : vector<1x128xf32> to vector<8x128xf32>
    %12 = arith.addf %10, %11 : vector<8x128xf32>
    %cst_8 = arith.constant 0.000000e+00 : f32
    %13 = vector.broadcast %cst_8 : f32 to vector<8x128xf32>
    %14 = arith.maximumf %12, %13 : vector<8x128xf32>
    %c160 = arith.constant 160 : index
    %c0_9 = arith.constant 0 : index
    %15 = vector.load %arg2[%c160, %c0_9] : memref<432x128xf32, #tpu.memory_space<vmem>>, vector<128x128xf32>
    %c288 = arith.constant 288 : index
    %c0_10 = arith.constant 0 : index
    %16 = vector.load %arg2[%c288, %c0_10] : memref<432x128xf32, #tpu.memory_space<vmem>>, vector<1x128xf32>
    %cst_11 = arith.constant dense<0.000000e+00> : vector<8x128xf32>
    %17 = tpu.matmul %14, %15, %cst_11 {dimension_numbers = #tpu.dot_dimension_numbers<[1], [0], [0], [1], [0, 0, 1, 1], [], []>} : vector<8x128xf32>, vector<128x128xf32>, vector<8x128xf32> -> vector<8x128xf32>
    %18 = vector.broadcast %16 : vector<1x128xf32> to vector<8x128xf32>
    %19 = arith.addf %17, %18 : vector<8x128xf32>
    %cst_12 = arith.constant 0.000000e+00 : f32
    %20 = vector.broadcast %cst_12 : f32 to vector<8x128xf32>
    %21 = arith.maximumf %19, %20 : vector<8x128xf32>
    %c296 = arith.constant 296 : index
    %c0_13 = arith.constant 0 : index
    %22 = vector.load %arg2[%c296, %c0_13] : memref<432x128xf32, #tpu.memory_space<vmem>>, vector<128x128xf32>
    %c424 = arith.constant 424 : index
    %c0_14 = arith.constant 0 : index
    %23 = vector.load %arg2[%c424, %c0_14] : memref<432x128xf32, #tpu.memory_space<vmem>>, vector<1x128xf32>
    %cst_15 = arith.constant dense<0.000000e+00> : vector<8x128xf32>
    %24 = tpu.matmul %21, %22, %cst_15 {dimension_numbers = #tpu.dot_dimension_numbers<[1], [0], [0], [1], [0, 0, 1, 1], [], []>} : vector<8x128xf32>, vector<128x128xf32>, vector<8x128xf32> -> vector<8x128xf32>
    %25 = vector.broadcast %23 : vector<1x128xf32> to vector<8x128xf32>
    %26 = arith.addf %24, %25 : vector<8x128xf32>
    %27 = vector.extract_strided_slice %26 {offsets = [0, 0], sizes = [8, 8], strides = [1, 1]} : vector<8x128xf32> to vector<8x8xf32>
    %28 = tpu.iota {dimensions = array<i32: 1>} : vector<8x8xi32>
    %c5_i32 = arith.constant 5 : i32
    %29 = vector.broadcast %c5_i32 : i32 to vector<8x8xi32>
    %30 = arith.cmpi slt, %28, %29 : vector<8x8xi32>
    %cst_16 = arith.constant -1.000000e+30 : f32
    %31 = vector.broadcast %cst_16 : f32 to vector<8x8xf32>
    %32 = arith.select %30, %27, %31 : vector<8x8xi1>, vector<8x8xf32>
    %cst_17 = arith.constant dense<0xFF800000> : vector<8xf32>
    %33 = vector.multi_reduction <maximumf>, %32, %cst_17 [1] : vector<8x8xf32> to vector<8xf32>
    %34 = vector.shape_cast %33 : vector<8xf32> to vector<8x1xf32>
    %35 = vector.broadcast %34 : vector<8x1xf32> to vector<8x8xf32>
    %36 = arith.subf %32, %35 : vector<8x8xf32>
    %37 = math.exp %36 : vector<8x8xf32>
    %cst_18 = arith.constant dense<0.000000e+00> : vector<8xf32>
    %38 = vector.multi_reduction <add>, %37, %cst_18 [1] : vector<8x8xf32> to vector<8xf32>
    %39 = vector.shape_cast %38 : vector<8xf32> to vector<8x1xf32>
    %40 = tpu.reciprocal %39 : vector<8x1xf32> -> vector<8x1xf32>
    %41 = vector.broadcast %40 : vector<8x1xf32> to vector<8x8xf32>
    %42 = arith.mulf %37, %41 : vector<8x8xf32>
    %c0_19 = arith.constant 0 : index
    %c0_20 = arith.constant 0 : index
    %43 = vector.load %arg3[%c0_19, %c0_20] : memref<8x8xf32, #tpu.memory_space<vmem>>, vector<8x8xf32>
    tpu.vector_store %arg3[%c0_19, %c0_20], %42 {strides = array<i32>} : memref<8x8xf32, #tpu.memory_space<vmem>>, vector<8x8xf32>,
    return
  }
  func.func @transform_0(%arg0: i32) -> (i32, i32) {
    %c0_i32 = arith.constant 0 : i32
    %c0_i32_0 = arith.constant 0 : i32
    return %arg0, %c0_i32 : i32, i32
  }
  func.func @transform_1(%arg0: i32) -> (i32, i32) {
    %c0_i32 = arith.constant 0 : i32
    %c0_i32_0 = arith.constant 0 : i32
    %c0_i32_1 = arith.constant 0 : i32
    return %c0_i32, %c0_i32_0 : i32, i32
  }
  func.func @transform_2(%arg0: i32) -> (i32, i32) {
    %c0_i32 = arith.constant 0 : i32
    %c0_i32_0 = arith.constant 0 : i32
    return %arg0, %c0_i32 : i32, i32
  }
}

</mosaic_0001>

<bundles_post_ra>
// kernel: tpu_custom_call.1
= control target key start
LH: loop header
LB: loop body
LE: loop exit
PB: predicated region body
PF: predicated region fallthrough
CT: control target
= control target key end

     0   :  { %7 = vsyncpa [#allocation3], 0  ;;  %s360_s0 = inlined_call_operand.hbm [shape: f32[8,16], index: 0, kind: input, shape index: {}]   ;;  %s361_s1 = inlined_call_operand.hbm [shape: f32[432,128], index: 1, kind: input, shape index: {}]   ;;  %s362_s2 = inlined_call_operand.hbm [shape: f32[8,8], index: 2, kind: output, shape index: {}]  }
   0x1   :  { %8 = vsyncpa [#allocation6], 0 }
   0x2   :  { %9 = vsyncpa [#allocation4], 0  ;;  %s15_s11 = sshll.u32 %s360_s0, 4  ;;  %s328_s12 = smov [#allocation2]   ;;  %s16_s11 = int_to_ptr.hbm [resolvable:$true] %s15_s11 }
   0x3   :  { %s17_s13 = sshll.u32 %s328_s12, 4  ;;  %s25_s16 = sshll.u32 %s361_s1, 4  ;;  %s18_s13 = int_to_ptr.vmem [resolvable:$true] %s17_s13  ;;  %s26_s16 = int_to_ptr.hbm [resolvable:$true] %s25_s16 }
   0x4   :  { %20 = dma.hbm_to_vmem [thread:$0]  %s16_s11, 128, %s18_s13, [#allocation3]  }
   0x5   :  { %s329_s17 = smov [#allocation5]   ;;  %s330_s19 = smov 128  }
   0x6   :  { %s27_s18 = sshll.u32 %s329_s17, 4  ;;  %s331_s20 = smov 8   ;;  %s28_s18 = int_to_ptr.vmem [resolvable:$true] %s27_s18 }
   0x7   :  { %33 = dma.hbm_to_vmem [thread:$0]  %s26_s16, 6912, %s28_s18, [#allocation6], %s330_s19, %s330_s19, %s331_s20  }
   0x8   :  { %322 = dma.done.wait [#allocation3], 128  }
   0x9   :  { %323 = vsyncadd [#allocation3], 4294967168 }
   0xa   :  { %324 = dma.done.wait [#allocation6], 6912  }
   0xb   :  { %325 = vsyncadd [#allocation6], 4294960384  ;;  %v44_v0 = vld [vmem:[#allocation5 + $0x8] sm:$0xff]  ;;  %v43_v1 = vld [vmem:[#allocation5] sm:$0xff]  ;;  %vm47_vm0 = vcmask 130048   ;;  %v188_v63 = vlaneseq  ;;  %vm192_vm2 = vcmask 64512  }
   0xc   :  { %65 = vmatpush.msra.mxu0 %v44_v0  ;;  %v42_v2 = vld [vmem:[#allocation2] sm:$0xff]  ;;  %v87_v3 = vld [vmem:[#allocation5 + $0x90] sm:$0xff]  ;;  %v86_v4 = vld [vmem:[#allocation5 + $0x88] sm:$0xff]  ;;  %s332_s0 = smov [#allocation7]   ;;  %s225_s23 = sshll.u32 %s362_s2, 4  ;;  %s226_s23 = int_to_ptr.hbm [resolvable:$true] %s225_s23 }
   0xd   :  { %90 = vmatpush.msra.mxu1 %v87_v3  ;;  %v85_v5 = vld [vmem:[#allocation5 + $0x80] sm:$0xff]  ;;  %v84_v6 = vld [vmem:[#allocation5 + $0x78] sm:$0xff]  ;;  %v83_v7 = vld [vmem:[#allocation5 + $0x70] sm:$0xff]  ;;  %v189_v0 = vand.u32 127, %v188_v63  ;;  %s223_s1 = sshll.u32 %s332_s0, 4  ;;  %s224_s1 = int_to_ptr.vmem [resolvable:$true] %s223_s1 }
   0xe   :  { %66 = vmatpush.msra.mxu0 %v43_v1  ;;  %v82_v8 = vld [vmem:[#allocation5 + $0x68] sm:$0xff]  ;;  %v81_v9 = vld [vmem:[#allocation5 + $0x60] sm:$0xff]  ;;  %v80_v10 = vld [vmem:[#allocation5 + $0x58] sm:$0xff] }
   0xf   :  { %236 = vmatmul.msk.f32.vlgmr.msra.gmra.mxu0 %vm47_vm0, %v42_v2  ;;  %91 = vmatpush.msra.mxu1 %v86_v4  ;;  %v79_v11 = vld [vmem:[#allocation5 + $0x50] sm:$0xff]  ;;  %v78_v12 = vld [vmem:[#allocation5 + $0x48] sm:$0xff]  ;;  %v77_v13 = vld [vmem:[#allocation5 + $0x40] sm:$0xff]  ;;  %vm190_vm1 = vcmp.lt.s32.totalorder %v189_v0, 5 }
  0x10   :  { %v76_v14 = vld [vmem:[#allocation5 + $0x38] sm:$0xff]  ;;  %v75_v15 = vld [vmem:[#allocation5 + $0x30] sm:$0xff]  ;;  %v74_v16 = vld [vmem:[#allocation5 + $0x28] sm:$0xff] }
  0x11   :  { %92 = vmatpush.msra.mxu1 %v85_v5  ;;  %v73_v17 = vld [vmem:[#allocation5 + $0x20] sm:$0xff]  ;;  %v72_v18 = vld [vmem:[#allocation5 + $0x18] sm:$0xff]  ;;  %v125_v20 = vld [vmem:[#allocation5 + $0x110] sm:$0xff] }
  0x12   :  { %v126_v19 = vld [vmem:[#allocation5 + $0x118] sm:$0xff]  ;;  %v124_v21 = vld [vmem:[#allocation5 + $0x108] sm:$0xff]  ;;  %v123_v22 = vld [vmem:[#allocation5 + $0x100] sm:$0xff] }
  0x13   :  { %93 = vmatpush.msra.mxu1 %v84_v6  ;;  %129 = vmatpush.msra.mxu2 %v126_v19  ;;  %v122_v23 = vld [vmem:[#allocation5 + $0xf8] sm:$0xff]  ;;  %v121_v24 = vld [vmem:[#allocation5 + $0xf0] sm:$0xff]  ;;  %v120_v25 = vld [vmem:[#allocation5 + $0xe8] sm:$0xff] }
  0x14   :  { %v119_v26 = vld [vmem:[#allocation5 + $0xe0] sm:$0xff]  ;;  %v118_v27 = vld [vmem:[#allocation5 + $0xd8] sm:$0xff]  ;;  %v117_v28 = vld [vmem:[#allocation5 + $0xd0] sm:$0xff] }
  0x15   :  { %94 = vmatpush.msra.mxu1 %v83_v7  ;;  %130 = vmatpush.msra.mxu2 %v125_v20  ;;  %v116_v29 = vld [vmem:[#allocation5 + $0xc8] sm:$0xff]  ;;  %v115_v30 = vld [vmem:[#allocation5 + $0xc0] sm:$0xff]  ;;  %v114_v31 = vld [vmem:[#allocation5 + $0xb8] sm:$0xff] }
  0x16   :  { %v242_v32 = vld [vmem:[#allocation5 + $0x10] ss:$0 sm:$0xff]  ;;  %v112_v37 = vld [vmem:[#allocation5 + $0xa8] sm:$0xff]  ;;  %v111_v38 = vld [vmem:[#allocation5 + $0xa0] sm:$0xff] }
  0x17   :  { %95 = vmatpush.msra.mxu1 %v82_v8  ;;  %131 = vmatpush.msra.mxu2 %v124_v21  ;;  %v113_v36 = vld [vmem:[#allocation5 + $0xb0] sm:$0xff]  ;;  %v165_v39 = vld [vmem:[#allocation5 + $0x1a0] sm:$0xff]  ;;  %v164_v40 = vld [vmem:[#allocation5 + $0x198] sm:$0xff] }
  0x18   :  { %168 = vmatpush.msra.mxu3 %v165_v39  ;;  %v163_v41 = vld [vmem:[#allocation5 + $0x190] sm:$0xff]  ;;  %v162_v42 = vld [vmem:[#allocation5 + $0x188] sm:$0xff]  ;;  %v161_v43 = vld [vmem:[#allocation5 + $0x180] sm:$0xff] }
  0x19   :  { %96 = vmatpush.msra.mxu1 %v81_v9  ;;  %132 = vmatpush.msra.mxu2 %v123_v22  ;;  %v160_v44 = vld [vmem:[#allocation5 + $0x178] sm:$0xff]  ;;  %v159_v45 = vld [vmem:[#allocation5 + $0x170] sm:$0xff]  ;;  %v158_v46 = vld [vmem:[#allocation5 + $0x168] sm:$0xff] }
  0x1a   :  { %169 = vmatpush.msra.mxu3 %v164_v40  ;;  %v157_v47 = vld [vmem:[#allocation5 + $0x160] sm:$0xff]  ;;  %v156_v48 = vld [vmem:[#allocation5 + $0x158] sm:$0xff]  ;;  %v155_v49 = vld [vmem:[#allocation5 + $0x150] sm:$0xff] }
  0x1b   :  { %97 = vmatpush.msra.mxu1 %v80_v10  ;;  %133 = vmatpush.msra.mxu2 %v122_v23  ;;  %v154_v50 = vld [vmem:[#allocation5 + $0x148] sm:$0xff]  ;;  %v153_v51 = vld [vmem:[#allocation5 + $0x140] sm:$0xff]  ;;  %v243_v52 = vld [vmem:[#allocation5 + $0x98] ss:$0 sm:$0xff] }
  0x1c   :  { %170 = vmatpush.msra.mxu3 %v163_v41  ;;  %v152_v56 = vld [vmem:[#allocation5 + $0x138] sm:$0xff]  ;;  %v151_v57 = vld [vmem:[#allocation5 + $0x130] sm:$0xff]  ;;  %v150_v58 = vld [vmem:[#allocation5 + $0x128] sm:$0xff] }
  0x1d   :  { %98 = vmatpush.msra.mxu1 %v79_v11  ;;  %134 = vmatpush.msra.mxu2 %v121_v24  ;;  %v244_v59 = vld [vmem:[#allocation5 + $0x120] ss:$0 sm:$0xff]  ;;  %v245_v1 = vld [vmem:[#allocation5 + $0x1a8] ss:$0 sm:$0xff] }
  0x1e   :  { %171 = vmatpush.msra.mxu3 %v162_v42 }
  0x1f   :  { %99 = vmatpush.msra.mxu1 %v78_v12  ;;  %135 = vmatpush.msra.mxu2 %v120_v25 }
  0x20   :  { %172 = vmatpush.msra.mxu3 %v161_v43 }
  0x21   :  { %100 = vmatpush.msra.mxu1 %v77_v13  ;;  %136 = vmatpush.msra.mxu2 %v119_v26 }
  0x22   :  { %173 = vmatpush.msra.mxu3 %v160_v44 }
  0x23   :  { %101 = vmatpush.msra.mxu1 %v76_v14  ;;  %137 = vmatpush.msra.mxu2 %v118_v27 }
  0x24   :  { %174 = vmatpush.msra.mxu3 %v159_v45 }
  0x25   :  { %102 = vmatpush.msra.mxu1 %v75_v15  ;;  %138 = vmatpush.msra.mxu2 %v117_v28 }
  0x26   :  { %175 = vmatpush.msra.mxu3 %v158_v46 }
  0x27   :  { %103 = vmatpush.msra.mxu1 %v74_v16  ;;  %139 = vmatpush.msra.mxu2 %v116_v29 }
  0x28   :  { %176 = vmatpush.msra.mxu3 %v157_v47 }
  0x29   :  { %104 = vmatpush.msra.mxu1 %v73_v17  ;;  %140 = vmatpush.msra.mxu2 %v115_v30 }
  0x2a   :  { %177 = vmatpush.msra.mxu3 %v156_v48 }
  0x2b   :  { %105 = vmatpush.msra.mxu1 %v72_v18  ;;  %141 = vmatpush.msra.mxu2 %v114_v31 }
  0x2c   :  { %178 = vmatpush.msra.mxu3 %v155_v49 }
  0x2d   :  { %142 = vmatpush.msra.mxu2 %v113_v36 }
  0x2e   :  { %179 = vmatpush.msra.mxu3 %v154_v50 }
  0x2f   :  { %143 = vmatpush.msra.mxu2 %v112_v37 }
  0x30   :  { %180 = vmatpush.msra.mxu3 %v153_v51 }
  0x31   :  { %144 = vmatpush.msra.mxu2 %v111_v38 }
  0x32   :  { %181 = vmatpush.msra.mxu3 %v152_v56 }
  0x34   :  { %182 = vmatpush.msra.mxu3 %v151_v57 }
  0x36   :  { %183 = vmatpush.msra.mxu3 %v150_v58 }
  0x8c   :  { %v68_v33 = vpop.f32.mrf.mxu0 }
  0x8d   :  { %v69_v34 = vadd.f32 %v242_v32, %v68_v33 }
  0x8f   :  { %v71_v35 = vmax.f32 %v69_v34, 0.0 }
  0x91   :  { %106 = vmatmul.f32.vlgmr.msra.gmra.mxu1 %v71_v35 }
 0x10e   :  { %v107_v53 = vpop.f32.mrf.mxu1 }
 0x10f   :  { %v108_v54 = vadd.f32 %v243_v52, %v107_v53 }
 0x111   :  { %v110_v55 = vmax.f32 %v108_v54, 0.0 }
 0x113   :  { %145 = vmatmul.f32.vlgmr.msra.gmra.mxu2 %v110_v55 }
 0x196   :  { %v146_v60 = vpop.f32.mrf.mxu2 }
 0x197   :  { %v147_v61 = vadd.f32 %v244_v59, %v146_v60 }
 0x199   :  { %v149_v62 = vmax.f32 %v147_v61, 0.0 }
 0x19b   :  { %184 = vmatmul.f32.vlgmr.msra.gmra.mxu3 %v149_v62 }
 0x21e   :  { %v185_v2 = vpop.f32.mrf.mxu3 }
 0x21f   :  { %v186_v3 = vadd.f32 %v245_v1, %v185_v2 }
 0x221   :  { %v191_v4 = vsel %vm190_vm1, %v186_v3, -1e+30 }
 0x222   :  { %v193_v5 = vsel %vm192_vm2, %v191_v4, -inf }
 0x223   :  { %194 = vmax.xlane.f32.xlu0 %v193_v5 }
 0x296   :  { %v195_v6 = vpop.xlane.xlu0 %194 }
 0x297   :  { %v196_v7 = vsub.f32 %v191_v4, %v195_v6 }
 0x299   :  { %v197_v8 = vmul.f32 1.442695, %v196_v7 }
 0x29b   :  { %246 = vpow2.f32 %v197_v8 }
 0x2a1   :  { %v247_v9 = vpop.eup %246 }
 0x2a2   :  { %v199_v10 = vsel %vm192_vm2, %v247_v9, 0.0 }
 0x2a3   :  { %200 = vadd.xlane.f32.xlu0 %v199_v10 }
 0x316   :  { %v201_v11 = vpop.xlane.xlu0 %200 }
 0x317   :  { %248 = vrcp.f32 %v201_v11  ;;  %v213_v15 = vand.u32 2147483648, %v201_v11  ;;  %v211_v17 = vand.u32 2147483647, %v201_v11  ;;  %vm207_vm4 = vweird.f32 %v201_v11 }
 0x319   :  { %v214_v19 = vor.u32 1.1754944e-38, %v213_v15  ;;  %vm212_vm6 = vcmp.eq.f32.partialorder %v211_v17, 8.507059e+37 }
 0x31d   :  { %v249_v12 = vpop.eup %248 }
 0x31e   :  { %v203_v13 = vmul.f32 %v249_v12, %v201_v11  ;;  %vm208_vm3 = vweird.f32 %v249_v12 }
 0x31f   :  { %vm209_vm5 = vmor %vm207_vm4, %vm208_vm3 }
 0x320   :  { %v204_v14 = vsub.f32 1.0, %v203_v13 }
 0x322   :  { %v205_v16 = vmul.f32 %v249_v12, %v204_v14 }
 0x324   :  { %v206_v18 = vadd.f32 %v249_v12, %v205_v16 }
 0x326   :  { %v210_v20 = vsel %vm209_vm5, %v249_v12, %v206_v18 }
 0x327   :  { %v215_v21 = vsel %vm212_vm6, %v214_v19, %v210_v20 }
 0x328   :  { %v216_v22 = vmul.f32 %v247_v9, %v215_v21 }
 0x32a   :  { %217 = vst.msk [vmem:[#allocation7] sm:$0xff] %vm192_vm2, %v216_v22 }
 0x32b   :  { %228 = dma.vmem_to_hbm [thread:$0]  %s224_s1, 128, %s226_s23, [#allocation4]  }
 0x32c   :  { %326 = dma.done.wait [#allocation4], 128  }
 0x32d   :  { %327 = vsyncadd [#allocation4], 4294967168 }
 0x32e   :  { %233 = vsyncpa [#allocation3], 1 }
 0x32f   :  { %234 = vsyncpa [#allocation6], 1 }
 0x330   :  { %235 = vsyncpa [#allocation4], 1 }

</bundles_post_ra>
